<compile_context>
chip_gen: v7x
topology: tpu7x:2x2x1
jax: 0.10.0
libtpu: 0.0.40
codegen_flags: <defaults>
</compile_context>

<pallas_src>
import math
from functools import partial

import jax
import jax.numpy as jnp
from jax.experimental import pallas as pl
from jax.experimental.pallas import tpu as pltpu


def _vmem_specs(n):
    return [pl.BlockSpec(memory_space=pltpu.MemorySpace.VMEM) for _ in range(n)]


def _layernorm(v, g, b, eps=1e-5):
    mu = jnp.mean(v, axis=-1, keepdims=True)
    var = jnp.mean((v - mu) ** 2, axis=-1, keepdims=True)
    return (v - mu) * jax.lax.rsqrt(var + eps) * g + b


# ---------------------------------------------------------------------------
# Fused patch-embedding kernel:
#   emb = patches @ Wt + b ; tok = concat(class_token, emb) + pos_emb
# ---------------------------------------------------------------------------
def _embed_kernel(xp_ref, wt_ref, b_ref, ct_ref, pos_ref, o_ref):
    B, NP, PD = xp_ref.shape
    E = o_ref.shape[-1]
    S = o_ref.shape[1]
    emb = jnp.dot(xp_ref[...].reshape(B * NP, PD), wt_ref[...],
                  preferred_element_type=jnp.float32)
    emb = (emb + b_ref[...]).reshape(B, NP, E)
    pos = pos_ref[...]                                   # (1, S, E)
    o_ref[:, 0:1, :] = jnp.broadcast_to(ct_ref[...] + pos[:, 0:1, :], (B, 1, E))
    o_ref[:, 1:S, :] = emb + pos[:, 1:S, :]


def pallas_embed(xp, emb_w, emb_b, class_token, pos_emb):
    B, NP, PD = xp.shape
    E = emb_w.shape[0]
    S = NP + 1
    return pl.pallas_call(
        _embed_kernel,
        out_shape=jax.ShapeDtypeStruct((B, S, E), jnp.float32),
        in_specs=_vmem_specs(5),
        out_specs=pl.BlockSpec(memory_space=pltpu.MemorySpace.VMEM),
    )(xp, emb_w.T, emb_b.reshape(1, E), class_token.reshape(1, 1, E), pos_emb)


# ---------------------------------------------------------------------------
# Fused TransformerBlock kernel on the flat (S*B, E) token slab:
#   x = x + MHA(LN1(x));  x = x + MLP(LN2(x))
# Attention runs over the B axis per token position (see layout note above).
# All projections are single flat 2-D matmuls; heads are folded into the
# output projection (no concatenate).
# ---------------------------------------------------------------------------
def _block_kernel(x_ref, ln1_g, ln1_b, inw, inb, ow, ob, ln2_g, ln2_b,
                  w1, b1, w2, b2, o_ref, *, num_heads, batch):
    xf = x_ref[...]                              # (S*B, E)
    SB, E = xf.shape
    B = batch
    S = SB // B
    hd = E // num_heads
    scale = 1.0 / math.sqrt(hd)

    # ---- multi-head attention branch ----
    nx = _layernorm(xf, ln1_g[...], ln1_b[...])
    qkv = jnp.dot(nx, inw[...], preferred_element_type=jnp.float32) + inb[...]
    q = (qkv[:, 0:E] * scale).reshape(S, B, E)
    k = qkv[:, E:2 * E].reshape(S, B, E)
    v = qkv[:, 2 * E:3 * E].reshape(S, B, E)

    wo = ow[...]                                 # (E, E) == out_w.T
    attn = jnp.zeros((SB, E), jnp.float32)
    for h in range(num_heads):                   # static unroll, small H
        sl = slice(h * hd, (h + 1) * hd)
        qh, kh, vh = q[:, :, sl], k[:, :, sl], v[:, :, sl]     # (S, B, hd)
        # attention over the B axis (PyTorch MHA sequence axis = module dim 0)
        s_ij = jnp.einsum('sid,sjd->sij', qh, kh,
                          preferred_element_type=jnp.float32)  # (S, B, B)
        s_ij = s_ij - jnp.max(s_ij, axis=-1, keepdims=True)
        p_ij = jnp.exp(s_ij)
        p_ij = p_ij * pl.reciprocal(jnp.sum(p_ij, axis=-1, keepdims=True),
                                    approx=True)
        ctx = jnp.einsum('sij,sjd->sid', p_ij, vh,
                         preferred_element_type=jnp.float32)   # (S, B, hd)
        # fold head straight into the output projection (no concat)
        attn = attn + jnp.dot(ctx.reshape(SB, hd), wo[sl, :],
                              preferred_element_type=jnp.float32)
    xf = xf + attn + ob[...]                     # residual 1

    # ---- MLP branch (hidden dim zero-padded to a lane-friendly width) ----
    nx2 = _layernorm(xf, ln2_g[...], ln2_b[...])
    h1 = jnp.maximum(
        jnp.dot(nx2, w1[...], preferred_element_type=jnp.float32) + b1[...], 0.0)
    xf = xf + jnp.dot(h1, w2[...], preferred_element_type=jnp.float32) + b2[...]

    o_ref[...] = xf.astype(o_ref.dtype)


def pallas_transformer_block(tok_flat, blk, num_heads, batch):
    SB, E = tok_flat.shape
    mh = blk['b1'].shape[0]                       # hidden_dim + 1 (layout-hostile)
    mh_pad = ((mh + 127) // 128) * 128            # zero-pad -> exact numerics
    w1t = jnp.zeros((E, mh_pad), jnp.float32).at[:, :mh].set(blk['w1'].T)
    b1p = jnp.zeros((1, mh_pad), jnp.float32).at[:, :mh].set(blk['b1'])
    w2t = jnp.zeros((mh_pad, E), jnp.float32).at[:mh, :].set(blk['w2'].T)
    args = (
        tok_flat,
        blk['ln1_g'].reshape(1, E), blk['ln1_b'].reshape(1, E),
        blk['in_w'].T, blk['in_b'].reshape(1, -1),
        blk['out_w'].T, blk['out_b'].reshape(1, E),
        blk['ln2_g'].reshape(1, E), blk['ln2_b'].reshape(1, E),
        w1t, b1p, w2t, blk['b2'].reshape(1, E),
    )
    return pl.pallas_call(
        partial(_block_kernel, num_heads=num_heads, batch=batch),
        out_shape=jax.ShapeDtypeStruct((SB, E), jnp.float32),
        in_specs=_vmem_specs(len(args)),
        out_specs=pl.BlockSpec(memory_space=pltpu.MemorySpace.VMEM),
    )(*args)


# ---------------------------------------------------------------------------
# Fused classification head: slice class-token rows + fcc0(ReLU)+fcc1(ReLU)+fcc2
# ---------------------------------------------------------------------------
def _head_kernel(tok_ref, w0, b0, w1, b1, w2, b2, o_ref, *, batch):
    cls = tok_ref[0:batch, :]                     # rows with s == 0 (class token)
    h = jnp.maximum(
        jnp.dot(cls, w0[...], preferred_element_type=jnp.float32) + b0[...], 0.0)
    h = jnp.maximum(
        jnp.dot(h, w1[...], preferred_element_type=jnp.float32) + b1[...], 0.0)
    o_ref[...] = (jnp.dot(h, w2[...], preferred_element_type=jnp.float32)
                  + b2[...]).astype(o_ref.dtype)


def pallas_fcc_head(tok_flat, params, batch):
    hid = params['fcc0_w'].shape[0]
    nc = params['fcc2_w'].shape[0]
    args = (
        tok_flat,
        params['fcc0_w'].T, params['fcc0_b'].reshape(1, hid),
        params['fcc1_w'].T, params['fcc1_b'].reshape(1, hid),
        params['fcc2_w'].T, params['fcc2_b'].reshape(1, nc),
    )
    return pl.pallas_call(
        partial(_head_kernel, batch=batch),
        out_shape=jax.ShapeDtypeStruct((batch, nc), jnp.float32),
        in_specs=_vmem_specs(len(args)),
        out_specs=pl.BlockSpec(memory_space=pltpu.MemorySpace.VMEM),
    )(*args)


# ---------------------------------------------------------------------------
# Full ViT forward
# ---------------------------------------------------------------------------
def vit_forward(x, params, *, patch_size, num_heads):
    B, C, H, W = x.shape
    p = patch_size
    nh, nw = H // p, W // p

    # einops 'b c (n_h p_h) (n_w p_w) -> b (n_h n_w) (p_h p_w c)'   (glue)
    xp = x.reshape(B, C, nh, p, nw, p)
    xp = xp.transpose(0, 2, 4, 3, 5, 1)                  # (B, n_h, n_w, p_h, p_w, C)
    xp = xp.reshape(B, nh * nw, p * p * C)

    tok = pallas_embed(xp, params['emb_w'], params['emb_b'],
                       params['class_token'], params['pos_emb'])   # (B, S, E)

    # sequence-major flat slab (S*B, E); attention mixes over B per token pos.
    S, E = tok.shape[1], tok.shape[2]
    tok = jnp.transpose(tok, (1, 0, 2)).reshape(S * B, E)

    for blk in params['blocks']:
        tok = pallas_transformer_block(tok, blk, num_heads, B)

    # fcc applied token-wise then sliced at token 0 == applying fcc to the
    # class-token rows only (rows 0..B-1 of the slab); fused in one kernel.
    return pallas_fcc_head(tok, params, B)                # (B, 3)


# ---------------------------------------------------------------------------
# Deterministic parameter construction (shapes follow ViT.__init__)
# ---------------------------------------------------------------------------
def init_params(key, *, embed_dim, hidden_dim, patch_size, img_size, n_blocks):
    n_patches = (img_size // patch_size) ** 2
    patch_dim = patch_size * patch_size * 3
    mlp_hidden = hidden_dim + 1          # TransformerBlock gets hidden_dim + 1

    def nrm(k, shape, scale=0.02):
        return scale * jax.random.normal(k, shape, dtype=jnp.float32)

    keys = iter(jax.random.split(key, 16 + 12 * n_blocks))
    params = {
        'emb_w': nrm(next(keys), (embed_dim, patch_dim)),
        'emb_b': nrm(next(keys), (embed_dim,)),
        'class_token': nrm(next(keys), (1, 1, embed_dim)),
        'pos_emb': nrm(next(keys), (1, n_patches + 1, embed_dim)),
        'fcc0_w': nrm(next(keys), (hidden_dim, embed_dim)),
        'fcc0_b': nrm(next(keys), (hidden_dim,)),
        'fcc1_w': nrm(next(keys), (hidden_dim, hidden_dim)),
        'fcc1_b': nrm(next(keys), (hidden_dim,)),
        'fcc2_w': nrm(next(keys), (3, hidden_dim)),
        'fcc2_b': nrm(next(keys), (3,)),
        'blocks': [],
    }
    for _ in range(n_blocks):
        params['blocks'].append({
            'ln1_g': jnp.ones((embed_dim,), jnp.float32),
            'ln1_b': jnp.zeros((embed_dim,), jnp.float32),
            'in_w': nrm(next(keys), (3 * embed_dim, embed_dim)),
            'in_b': nrm(next(keys), (3 * embed_dim,)),
            'out_w': nrm(next(keys), (embed_dim, embed_dim)),
            'out_b': nrm(next(keys), (embed_dim,)),
            'ln2_g': jnp.ones((embed_dim,), jnp.float32),
            'ln2_b': jnp.zeros((embed_dim,), jnp.float32),
            'w1': nrm(next(keys), (mlp_hidden, embed_dim)),
            'b1': nrm(next(keys), (mlp_hidden,)),
            'w2': nrm(next(keys), (embed_dim, mlp_hidden)),
            'b2': nrm(next(keys), (embed_dim,)),
        })
    return params


if __name__ == "__main__":
    # Small, consistent shapes: batch=2, 3-channel 16x16 image, 8x8 patches
    embed_dim, num_heads, hidden_dim = 32, 4, 32
    patch_size, img_sz, n_blocks = 8, 16, 2

    key = jax.random.PRNGKey(0)
    pkey, xkey = jax.random.split(key)
    params = init_params(pkey, embed_dim=embed_dim, hidden_dim=hidden_dim,
                         patch_size=patch_size, img_size=img_sz,
                         n_blocks=n_blocks)
    x = jax.random.normal(xkey, (2, 3, img_sz, img_sz), dtype=jnp.float32)

    out = vit_forward(x, params, patch_size=patch_size, num_heads=num_heads)
    out = jax.block_until_ready(out)
    assert out.shape == (2, 3) and out.dtype == jnp.float32
    print("KERNEL_OK")
</pallas_src>

<mosaic_0001>
module attributes {stable_mosaic.version = 11 : i64} {
  func.func @_embed_kernel(%arg0: memref<2x4x192xf32, #tpu.memory_space<vmem>>, %arg1: memref<192x32xf32, #tpu.memory_space<vmem>>, %arg2: memref<1x32xf32, #tpu.memory_space<vmem>>, %arg3: memref<1x1x32xf32, #tpu.memory_space<vmem>>, %arg4: memref<1x5x32xf32, #tpu.memory_space<vmem>>, %arg5: memref<2x5x32xf32, #tpu.memory_space<vmem>>) attributes {dimension_semantics = [], scalar_prefetch = 0 : i64, scratch_operands = 0 : i64, tpu.core_type = #tpu.core_type<tc>} {
    %c0 = arith.constant 0 : index
    %c0_0 = arith.constant 0 : index
    %c0_1 = arith.constant 0 : index
    %0 = vector.load %arg0[%c0, %c0_0, %c0_1] : memref<2x4x192xf32, #tpu.memory_space<vmem>>, vector<2x4x192xf32>
    %1 = vector.shape_cast %0 : vector<2x4x192xf32> to vector<8x192xf32>
    %c0_2 = arith.constant 0 : index
    %c0_3 = arith.constant 0 : index
    %2 = vector.load %arg1[%c0_2, %c0_3] : memref<192x32xf32, #tpu.memory_space<vmem>>, vector<192x32xf32>
    %cst = arith.constant dense<0.000000e+00> : vector<8x32xf32>
    %3 = tpu.matmul %1, %2, %cst {dimension_numbers = #tpu.dot_dimension_numbers<[1], [0], [0], [1], [0, 0, 1, 1], [], []>} : vector<8x192xf32>, vector<192x32xf32>, vector<8x32xf32> -> vector<8x32xf32>
    %c0_4 = arith.constant 0 : index
    %c0_5 = arith.constant 0 : index
    %4 = vector.load %arg2[%c0_4, %c0_5] : memref<1x32xf32, #tpu.memory_space<vmem>>, vector<1x32xf32>
    %5 = vector.broadcast %4 : vector<1x32xf32> to vector<8x32xf32>
    %6 = arith.addf %3, %5 : vector<8x32xf32>
    %7 = vector.shape_cast %6 : vector<8x32xf32> to vector<2x4x32xf32>
    %c0_6 = arith.constant 0 : index
    %c0_7 = arith.constant 0 : index
    %c0_8 = arith.constant 0 : index
    %8 = vector.load %arg4[%c0_6, %c0_7, %c0_8] : memref<1x5x32xf32, #tpu.memory_space<vmem>>, vector<1x5x32xf32>
    %c0_9 = arith.constant 0 : index
    %c0_10 = arith.constant 0 : index
    %c0_11 = arith.constant 0 : index
    %9 = vector.load %arg3[%c0_9, %c0_10, %c0_11] : memref<1x1x32xf32, #tpu.memory_space<vmem>>, vector<1x1x32xf32>
    %10 = vector.extract_strided_slice %8 {offsets = [0, 0, 0], sizes = [1, 1, 32], strides = [1, 1, 1]} : vector<1x5x32xf32> to vector<1x1x32xf32>
    %11 = arith.addf %9, %10 : vector<1x1x32xf32>
    %12 = vector.shape_cast %11 : vector<1x1x32xf32> to vector<1x1x32xf32>
    %13 = vector.broadcast %12 : vector<1x1x32xf32> to vector<2x1x32xf32>
    %c0_12 = arith.constant 0 : index
    %c0_13 = arith.constant 0 : index
    %c0_14 = arith.constant 0 : index
    %14 = vector.load %arg5[%c0_12, %c0_13, %c0_14] : memref<2x5x32xf32, #tpu.memory_space<vmem>>, vector<2x1x32xf32>
    tpu.vector_store %arg5[%c0_12, %c0_13, %c0_14], %13 {strides = array<i32>} : memref<2x5x32xf32, #tpu.memory_space<vmem>>, vector<2x1x32xf32>,
    %15 = vector.extract_strided_slice %8 {offsets = [0, 1, 0], sizes = [1, 4, 32], strides = [1, 1, 1]} : vector<1x5x32xf32> to vector<1x4x32xf32>
    %16 = vector.broadcast %15 : vector<1x4x32xf32> to vector<2x4x32xf32>
    %17 = arith.addf %7, %16 : vector<2x4x32xf32>
    %c0_15 = arith.constant 0 : index
    %c1 = arith.constant 1 : index
    %c0_16 = arith.constant 0 : index
    %18 = vector.load %arg5[%c0_15, %c1, %c0_16] : memref<2x5x32xf32, #tpu.memory_space<vmem>>, vector<2x4x32xf32>
    tpu.vector_store %arg5[%c0_15, %c1, %c0_16], %17 {strides = array<i32>} : memref<2x5x32xf32, #tpu.memory_space<vmem>>, vector<2x4x32xf32>,
    return
  }
}

</mosaic_0001>

<bundles_post_ra>
// kernel: tpu_custom_call.1
= control target key start
LH: loop header
LB: loop body
LE: loop exit
PB: predicated region body
PF: predicated region fallthrough
CT: control target
= control target key end

     0   :  { %v202_v0 = vmov 0.0|0.0   ;;  %vm58_vm0 = vcmask 523264   ;;  %vm137_vm1 = vcmask 253952   ;;  %vm142_vm2 = vcmask 1042432   ;;  %s344_s1 = inlined_call_operand.vmem [shape: f32[192,32], index: 1, kind: input, shape index: {}]   ;;  %s345_s0 = inlined_call_operand.vmem [shape: f32[2,4,192], index: 0, kind: input, shape index: {}]   ;;  %s346_s3 = inlined_call_operand.vmem [shape: f32[1,1,32], index: 3, kind: input, shape index: {}]   ;;  %s347_s4 = inlined_call_operand.vmem [shape: f32[1,5,32], index: 4, kind: input, shape index: {}]   ;;  %s348_s5 = inlined_call_operand.vmem [shape: f32[2,5,32], index: 5, kind: output, shape index: {}]   ;;  %s349_s2 = inlined_call_operand.vmem [shape: f32[1,32], index: 2, kind: input, shape index: {}]  }
   0x1   :  { %162 = vmatprep.subr.bf16.mxu0 %v202_v0  ;;  %v22_v1 = vld [vmem:[%s344_s1] sm:$0xff]  ;;  %v23_v2 = vld [vmem:[%s344_s1 + $0x8] sm:$0xff]  ;;  %v24_v3 = vld [vmem:[%s344_s1 + $0x10] sm:$0xff]  ;;  %vm143_vm3 = vcmask 1046532   ;;  %vm152_vm5 = vcmask 257024  }
   0x2   :  { %v163_v4 = vpack.c.bf16 %v23_v2, %v22_v1  ;;  %v25_v5 = vld [vmem:[%s344_s1 + $0x18] sm:$0xff]  ;;  %v26_v7 = vld [vmem:[%s344_s1 + $0x20] sm:$0xff]  ;;  %v27_v8 = vld [vmem:[%s344_s1 + $0x28] sm:$0xff] }
   0x3   :  { %v166_v6 = vpack.c.bf16 %v25_v5, %v24_v3  ;;  %v169_v9 = vpack.c.bf16 %v27_v8, %v26_v7  ;;  %v28_v10 = vld [vmem:[%s344_s1 + $0x30] sm:$0xff]  ;;  %v29_v11 = vld [vmem:[%s344_s1 + $0x38] sm:$0xff]  ;;  %v201_v12 = vld [vmem:[%s345_s0 + $0x4] ss:$8 sps:$4 sm:$0xff]  }
   0x4   :  { %164 = vmatpush1.bf16.msra.mxu0 %v163_v4  ;;  %v172_v13 = vpack.c.bf16 %v29_v11, %v28_v10  ;;  %160 = vmatprep.mubr.msk.f32.mxu0 %vm58_vm0, %v201_v12  ;;  %v30_v14 = vld [vmem:[%s344_s1 + $0x40] sm:$0xff]  ;;  %v31_v15 = vld [vmem:[%s344_s1 + $0x48] sm:$0xff]  ;;  %v32_v17 = vld [vmem:[%s344_s1 + $0x50] sm:$0xff] }
   0x5   :  { %165 = vmatprep.subr.bf16.mxu0 %v202_v0  ;;  %v175_v16 = vpack.c.bf16 %v31_v15, %v30_v14  ;;  %v33_v18 = vld [vmem:[%s344_s1 + $0x58] sm:$0xff]  ;;  %v34_v20 = vld [vmem:[%s344_s1 + $0x60] sm:$0xff]  ;;  %v35_v21 = vld [vmem:[%s344_s1 + $0x68] sm:$0xff] }
   0x6   :  { %v178_v19 = vpack.c.bf16 %v33_v18, %v32_v17  ;;  %v181_v22 = vpack.c.bf16 %v35_v21, %v34_v20  ;;  %v36_v23 = vld [vmem:[%s344_s1 + $0x70] sm:$0xff]  ;;  %v37_v24 = vld [vmem:[%s344_s1 + $0x78] sm:$0xff]  ;;  %v38_v26 = vld [vmem:[%s344_s1 + $0x80] sm:$0xff] }
   0x7   :  { %v184_v25 = vpack.c.bf16 %v37_v24, %v36_v23  ;;  %v39_v27 = vld [vmem:[%s344_s1 + $0x88] sm:$0xff]  ;;  %v40_v29 = vld [vmem:[%s344_s1 + $0x90] sm:$0xff]  ;;  %v41_v30 = vld [vmem:[%s344_s1 + $0x98] sm:$0xff] }
   0x8   :  { %167 = vmatpush1.bf16.msra.mxu0 %v166_v6  ;;  %v187_v28 = vpack.c.bf16 %v39_v27, %v38_v26  ;;  %v190_v31 = vpack.c.bf16 %v41_v30, %v40_v29  ;;  %v42_v32 = vld [vmem:[%s344_s1 + $0xa0] sm:$0xff]  ;;  %v43_v33 = vld [vmem:[%s344_s1 + $0xa8] sm:$0xff]  ;;  %v44_v35 = vld [vmem:[%s344_s1 + $0xb0] sm:$0xff] }
   0x9   :  { %168 = vmatprep.subr.bf16.mxu0 %v202_v0  ;;  %v193_v34 = vpack.c.bf16 %v43_v33, %v42_v32  ;;  %v45_v36 = vld [vmem:[%s344_s1 + $0xb8] sm:$0xff]  ;;  %v199_v38 = vld [vmem:[%s345_s0] ss:$8 sps:$4 sm:$0xff]   ;;  %vm144_vm4 = vmor %vm142_vm2, %vm143_vm3 }
   0xa   :  { %v196_v37 = vpack.c.bf16 %v45_v36, %v44_v35  ;;  %v134_v39 = vld [vmem:[%s347_s4] sm:$0x1f] }
   0xb   :  { %v135_v40 = vld [vmem:[%s346_s3] sm:$0x1]  ;;  %v141_v42 = vcombine.high %v134_v39, %v134_v39  ;;  %v161_v43 = vrot.slane %v134_v39, 9 }
   0xc   :  { %170 = vmatpush1.bf16.msra.mxu0 %v169_v9  ;;  %v136_v41 = vadd.f32 %v135_v40, %v134_v39  ;;  %v159_v45 = vld [vmem:[%s349_s2] ss:$0 sm:$0xff] }
   0xd   :  { %171 = vmatprep.subr.bf16.mxu0 %v202_v0  ;;  %v147_v44 = vrot.slane %v141_v42, 5 }
   0xe   :  { %138 = vst.msk [vmem:[%s348_s5] sm:$0x1] %vm137_vm1, %v136_v41  ;;  %139 = vst.msk [vmem:[%s348_s5 + $0x8] sm:$0x1] %vm137_vm1, %v136_v41 }
   0xf   :  { %v148_v47 = vsel %vm144_vm4, %v161_v43, %v147_v44 }
  0x10   :  { %173 = vmatpush1.bf16.msra.mxu0 %v172_v13 }
  0x11   :  { %174 = vmatprep.subr.bf16.mxu0 %v202_v0 }
  0x14   :  { %176 = vmatpush1.bf16.msra.mxu0 %v175_v16 }
  0x15   :  { %177 = vmatprep.subr.bf16.mxu0 %v202_v0 }
  0x18   :  { %179 = vmatpush1.bf16.msra.mxu0 %v178_v19 }
  0x19   :  { %180 = vmatprep.subr.bf16.mxu0 %v202_v0 }
  0x1c   :  { %182 = vmatpush1.bf16.msra.mxu0 %v181_v22 }
  0x1d   :  { %183 = vmatprep.subr.bf16.mxu0 %v202_v0 }
  0x20   :  { %185 = vmatpush1.bf16.msra.mxu0 %v184_v25 }
  0x21   :  { %186 = vmatprep.subr.bf16.mxu0 %v202_v0 }
  0x24   :  { %188 = vmatpush1.bf16.msra.mxu0 %v187_v28 }
  0x25   :  { %189 = vmatprep.subr.bf16.mxu0 %v202_v0 }
  0x28   :  { %191 = vmatpush1.bf16.msra.mxu0 %v190_v31 }
  0x29   :  { %192 = vmatprep.subr.bf16.mxu0 %v202_v0 }
  0x2c   :  { %194 = vmatpush1.bf16.msra.mxu0 %v193_v34 }
  0x2d   :  { %195 = vmatprep.subr.bf16.mxu0 %v202_v0 }
  0x30   :  { %197 = vmatpush1.bf16.msra.mxu0 %v196_v37 }
  0x33   :  { %126 = vmatmul.mubr.f32.vlgmr.msra.gmra.mrb[0].mxu0 %v199_v38 }
 0x106   :  { %v127_v46 = vpop.f32.mrb[0].mxu0 }
 0x107   :  { %v128_v48 = vadd.f32 %v159_v45, %v127_v46  ;;  %v129_v49 = vpop.f32.mrb[1].mxu0 }
 0x109   :  { %v132_v50 = vcombine.high %v128_v48, %v128_v48  ;;  %v150_v51 = vadd.f32 %v148_v47, %v128_v48 }
 0x10b   :  { %v151_v52 = vadd.f32 %v148_v47, %v132_v50  ;;  %153 = vst.msk [vmem:[%s348_s5 + $0x1] sm:$0xf] %vm152_vm5, %v150_v51 }
 0x10d   :  { %154 = vst.msk [vmem:[%s348_s5 + $0x9] sm:$0xf] %vm152_vm5, %v151_v52 }

</bundles_post_ra>
